<compile_context>
chip_gen: v7x
topology: tpu7x:2x2x1
jax: 0.10.0
libtpu: 0.0.40
codegen_flags: <defaults>
</compile_context>

<pallas_src>
import functools

import jax
import jax.numpy as jnp
from jax import lax
from jax.experimental import pallas as pl
from jax.experimental.pallas import tpu as pltpu

BN_EPS = 1e-5

# Conservative, generation-agnostic budgets (v7x has only 64 MiB physical VMEM).
FUSED_VMEM_BUDGET = 8 * 1024 * 1024     # use the single fused call if x+y fit here
TILE_VMEM_BUDGET = 24 * 1024 * 1024     # double-buffered tile budget for the fallback
VMEM_LIMIT_BYTES = 48 * 1024 * 1024     # explicit scoped VMEM limit (< 64 MiB on v7x)


# --------------------------------------------------------------------------------------
# Fast path: whole op in a single no-grid pallas_call (everything resident in VMEM).
# --------------------------------------------------------------------------------------
def _fused_conv_bn_relu_kernel(w_ref, gamma_ref, beta_ref, x_ref, o_ref, *, m):
    # w: (Cout, Cin), gamma/beta: (Cout, 1), x: (N, Cin, HW), o: (N, Cout, HW).
    n_batch = x_ref.shape[0]
    w = w_ref[...]
    inv_m = 1.0 / m

    # Pass A: y = W x per batch element (o_ref doubles as VMEM scratch) + per-channel sums.
    s = None
    for n in range(n_batch):
        y_n = jnp.dot(w, x_ref[n], preferred_element_type=jnp.float32)   # (Cout, HW)
        o_ref[n] = y_n
        s_n = jnp.sum(y_n, axis=1, keepdims=True)                        # (Cout, 1)
        s = s_n if s is None else s + s_n
    mean = s * inv_m                                                      # (Cout, 1)

    # Pass B: exact centered variance (no E[y^2] - E[y]^2 cancellation).
    v = None
    for n in range(n_batch):
        d = o_ref[n] - mean
        v_n = jnp.sum(d * d, axis=1, keepdims=True)
        v = v_n if v is None else v + v_n
    var = v * inv_m

    inv_std = lax.rsqrt(var + BN_EPS)
    scale = gamma_ref[...] * inv_std                                      # (Cout, 1)
    shift = beta_ref[...] - mean * scale

    # Pass C: affine BatchNorm + ReLU, written in place (only this hits HBM).
    for n in range(n_batch):
        o_ref[n] = jnp.maximum(o_ref[n] * scale + shift, 0.0)


# --------------------------------------------------------------------------------------
# Large-input fallback: pass 1 = per-channel sum + Cin x Cin Gram of x (accumulators).
# --------------------------------------------------------------------------------------
def _stats_kernel(x_ref, sum_ref, gram_ref, *, hw, tile):
    n = pl.program_id(0)
    t = pl.program_id(1)

    @pl.when((n == 0) & (t == 0))
    def _():
        sum_ref[...] = jnp.zeros_like(sum_ref)
        gram_ref[...] = jnp.zeros_like(gram_ref)

    x = x_ref[...]                                             # (Cin, T)
    # Mask padded lane columns of a ragged last tile so they don't pollute the stats.
    col = lax.broadcasted_iota(jnp.int32, x.shape, 1)
    x = jnp.where(col < (hw - t * tile), x, 0.0)

    sum_ref[...] += jnp.sum(x, axis=1, keepdims=True)
    gram_ref[...] += lax.dot_general(
        x, x, (((1,), (1,)), ((), ())), preferred_element_type=jnp.float32)


# Pass 2: fused 1x1 conv + folded BatchNorm + ReLU, output directly in NCHW.
def _conv_bn_relu_kernel(w_ref, gamma_ref, beta_ref, sum_ref, gram_ref, x_ref, o_ref, *, m):
    # The O(Cout*Cin) BN fold is recomputed every grid step (a few hundred MACs, i.e.
    # free) instead of round-tripping scale/shift through HBM or relying on step-0
    # scratch init (which would break under megacore 'parallel' sharding).
    w = w_ref[...]                                             # (Cout, Cin)
    inv_m = 1.0 / m
    mean_x = sum_ref[...] * inv_m                              # (Cin, 1)
    cov_x = gram_ref[...] * inv_m - mean_x * mean_x.T          # (Cin, Cin), biased
    mean_y = jnp.dot(w, mean_x, preferred_element_type=jnp.float32)        # (Cout, 1)
    var_y = jnp.sum(jnp.dot(w, cov_x, preferred_element_type=jnp.float32) * w,
                    axis=1, keepdims=True)                     # (Cout, 1)
    var_y = jnp.maximum(var_y, 0.0)
    inv_std = lax.rsqrt(var_y + BN_EPS)
    scale = gamma_ref[...] * inv_std
    shift = beta_ref[...] - mean_y * scale

    w_eff = w * scale                                          # fold BN scale into W
    y = jnp.dot(w_eff, x_ref[...], preferred_element_type=jnp.float32)
    o_ref[...] = jnp.maximum(y + shift, 0.0).astype(o_ref.dtype)


def _pick_hw_tile(hw, cin, cout, budget_bytes=TILE_VMEM_BUDGET):
    """Largest multiple of 128 whose double-buffered footprint fits the VMEM budget."""
    max_t = budget_bytes // (2 * (cin + cout) * 4)             # ~2*(Cin+Cout)*T*4 bytes/step
    max_t = max(128, (max_t // 128) * 128)
    hw_pad = pl.cdiv(hw, 128) * 128
    return int(min(max_t, hw_pad, 4096))


def fpn_forward(inputs, conv_w, gamma, beta, *, force_two_pass=False):
    """FPN.forward: l_conv4 (1x1, no bias) -> l_bn4 (training batch stats) -> ReLU.

    inputs : list of NCHW tensors; only inputs[3] is used (matches the torch module).
    conv_w : (Cout, Cin, 1, 1) l_conv4 weight; gamma/beta: (Cout,) l_bn4 params.
    returns (N, Cout, H, W) float32 in NCHW.
    """
    x_nchw = inputs[3]
    N, Cin, H, W = x_nchw.shape
    Cout = conv_w.shape[0]
    HW = H * W
    M = N * HW

    x3d = x_nchw.reshape(N, Cin, HW)                # free reshape; stays channel-major
    w2d = conv_w.reshape(Cout, Cin)
    g2 = gamma.reshape(Cout, 1).astype(jnp.float32)
    b2 = beta.reshape(Cout, 1).astype(jnp.float32)

    fused_bytes = 4 * (N * Cin * HW + N * Cout * HW + Cout * Cin + 2 * Cout)
    if (not force_two_pass) and fused_bytes <= FUSED_VMEM_BUDGET:
        # ---- single fused call: one launch, everything in VMEM ----
        vmem = pl.BlockSpec(memory_space=pltpu.MemorySpace.VMEM)
        out3d = pl.pallas_call(
            functools.partial(_fused_conv_bn_relu_kernel, m=float(M)),
            out_shape=jax.ShapeDtypeStruct((N, Cout, HW), jnp.float32),
            in_specs=[vmem, vmem, vmem, vmem],
            out_specs=vmem,
            compiler_params=pltpu.CompilerParams(vmem_limit_bytes=VMEM_LIMIT_BYTES),
        )(w2d, g2, b2, x3d)
        return out3d.reshape(N, Cout, H, W)

    # ---- fallback for large inputs: two pipelined passes ----
    T = _pick_hw_tile(HW, Cin, Cout)
    grid = (N, pl.cdiv(HW, T))

    # Pass 1: global per-channel sum + Gram of x (resident accumulators).
    # TODO(synk): on v7x, add a leading 'parallel' core axis with per-core partial
    # sums so the second TensorCore contributes to this reduction.
    sum_x, gram = pl.pallas_call(
        functools.partial(_stats_kernel, hw=HW, tile=T),
        out_shape=(jax.ShapeDtypeStruct((Cin, 1), jnp.float32),
                   jax.ShapeDtypeStruct((Cin, Cin), jnp.float32)),
        grid_spec=pl.GridSpec(
            grid=grid,
            in_specs=[pl.BlockSpec((None, Cin, T), lambda n, t: (n, 0, t))],
            out_specs=(pl.BlockSpec((Cin, 1), lambda n, t: (0, 0)),
                       pl.BlockSpec((Cin, Cin), lambda n, t: (0, 0))),
        ),
        compiler_params=pltpu.CompilerParams(
            dimension_semantics=("arbitrary", "arbitrary"),
            vmem_limit_bytes=VMEM_LIMIT_BYTES),
    )(x3d)

    # Pass 2: conv + BN fold (done in-kernel from sum/gram) + ReLU, output in NCHW.
    out3d = pl.pallas_call(
        functools.partial(_conv_bn_relu_kernel, m=float(M)),
        out_shape=jax.ShapeDtypeStruct((N, Cout, HW), jnp.float32),
        grid_spec=pl.GridSpec(
            grid=grid,
            in_specs=[
                pl.BlockSpec((Cout, Cin), lambda n, t: (0, 0)),
                pl.BlockSpec((Cout, 1), lambda n, t: (0, 0)),
                pl.BlockSpec((Cout, 1), lambda n, t: (0, 0)),
                pl.BlockSpec((Cin, 1), lambda n, t: (0, 0)),
                pl.BlockSpec((Cin, Cin), lambda n, t: (0, 0)),
                pl.BlockSpec((None, Cin, T), lambda n, t: (n, 0, t)),
            ],
            out_specs=pl.BlockSpec((None, Cout, T), lambda n, t: (n, 0, t)),
        ),
        compiler_params=pltpu.CompilerParams(
            dimension_semantics=("parallel", "parallel"),
            vmem_limit_bytes=VMEM_LIMIT_BYTES),
    )(w2d, g2, b2, sum_x, gram, x3d)
    return out3d.reshape(N, Cout, H, W)


def reference_forward(x_nchw, conv_w, gamma, beta):
    """Pure-JAX reference mirroring torch: conv1x1 -> BN (training stats) -> ReLU."""
    Cout, Cin = conv_w.shape[0], conv_w.shape[1]
    y = jnp.einsum('oc,nchw->nohw', conv_w.reshape(Cout, Cin), x_nchw)
    mean = y.mean(axis=(0, 2, 3), keepdims=True)
    var = y.var(axis=(0, 2, 3), keepdims=True)       # biased, as in BN training mode
    y_hat = (y - mean) * lax.rsqrt(var + BN_EPS)
    out = y_hat * gamma.reshape(1, -1, 1, 1) + beta.reshape(1, -1, 1, 1)
    return jnp.maximum(out, 0.0)


if __name__ == "__main__":
    # Module config (deterministic, small): in_channels=[4,8,16,8], out_channel=32.
    # forward() only touches inputs[3] (Cin=8) through l_conv4 / l_bn4 / relu.
    in_channels = [4, 8, 16, 8]
    out_channel = 32
    N, H, W = 2, 16, 16

    key = jax.random.PRNGKey(0)
    keys = jax.random.split(key, 5)
    inputs = [jax.random.normal(keys[i], (N, c, H, W), dtype=jnp.float32)
              for i, c in enumerate(in_channels)]

    # l_conv4 weight per init_weights(): N(0, sqrt(2/(k*k*Cout))); l_bn4: gamma=1, beta=0.
    std = (2.0 / (1 * 1 * out_channel)) ** 0.5
    conv_w4 = std * jax.random.normal(
        keys[4], (out_channel, in_channels[3], 1, 1), dtype=jnp.float32)
    gamma4 = jnp.ones((out_channel,), dtype=jnp.float32)
    beta4 = jnp.zeros((out_channel,), dtype=jnp.float32)

    # TODO(synk): BatchNorm running_mean/running_var buffer updates (training-mode side
    # effect on module state) are not part of the returned tensor and are not modeled.

    ref = reference_forward(inputs[3], conv_w4, gamma4, beta4)

    # Fast path (single fused pallas_call) — the path exercised at this problem size.
    out = fpn_forward(inputs, conv_w4, gamma4, beta4)
    jax.block_until_ready(out)
    assert out.shape == (N, out_channel, H, W)
    assert jnp.allclose(out, ref, atol=1e-4, rtol=1e-4)

    # Large-input fallback (two-pass) exercised too, for coverage.
    out2 = fpn_forward(inputs, conv_w4, gamma4, beta4, force_two_pass=True)
    jax.block_until_ready(out2)
    assert jnp.allclose(out2, ref, atol=1e-4, rtol=1e-4)

    print("KERNEL_OK")
</pallas_src>

<mosaic_0001>
module attributes {stable_mosaic.version = 11 : i64} {
  func.func @_fused_conv_bn_relu_kernel(%arg0: memref<32x8xf32, #tpu.memory_space<vmem>>, %arg1: memref<32x1xf32, #tpu.memory_space<vmem>>, %arg2: memref<32x1xf32, #tpu.memory_space<vmem>>, %arg3: memref<2x8x256xf32, #tpu.memory_space<vmem>>, %arg4: memref<2x32x256xf32, #tpu.memory_space<vmem>>) attributes {dimension_semantics = [], scalar_prefetch = 0 : i64, scratch_operands = 0 : i64, tpu.core_type = #tpu.core_type<tc>} {
    %c0 = arith.constant 0 : index
    %c0_0 = arith.constant 0 : index
    %0 = vector.load %arg0[%c0, %c0_0] : memref<32x8xf32, #tpu.memory_space<vmem>>, vector<32x8xf32>
    %c0_1 = arith.constant 0 : index
    %c0_2 = arith.constant 0 : index
    %c0_3 = arith.constant 0 : index
    %1 = vector.load %arg3[%c0_1, %c0_2, %c0_3] : memref<2x8x256xf32, #tpu.memory_space<vmem>>, vector<1x8x256xf32>
    %2 = vector.shape_cast %1 : vector<1x8x256xf32> to vector<8x256xf32>
    %cst = arith.constant dense<0.000000e+00> : vector<32x256xf32>
    %3 = tpu.matmul %0, %2, %cst {dimension_numbers = #tpu.dot_dimension_numbers<[1], [0], [0], [1], [0, 0, 1, 1], [], []>} : vector<32x8xf32>, vector<8x256xf32>, vector<32x256xf32> -> vector<32x256xf32>
    %c0_4 = arith.constant 0 : index
    %c0_5 = arith.constant 0 : index
    %c0_6 = arith.constant 0 : index
    %4 = vector.load %arg4[%c0_4, %c0_5, %c0_6] : memref<2x32x256xf32, #tpu.memory_space<vmem>>, vector<1x32x256xf32>
    %5 = vector.shape_cast %4 : vector<1x32x256xf32> to vector<32x256xf32>
    %6 = vector.shape_cast %3 : vector<32x256xf32> to vector<1x32x256xf32>
    tpu.vector_store %arg4[%c0_4, %c0_5, %c0_6], %6 {strides = array<i32>} : memref<2x32x256xf32, #tpu.memory_space<vmem>>, vector<1x32x256xf32>,
    %cst_7 = arith.constant dense<0.000000e+00> : vector<32xf32>
    %7 = vector.multi_reduction <add>, %3, %cst_7 [1] : vector<32x256xf32> to vector<32xf32>
    %8 = vector.shape_cast %7 : vector<32xf32> to vector<32x1xf32>
    %c1 = arith.constant 1 : index
    %c0_8 = arith.constant 0 : index
    %c0_9 = arith.constant 0 : index
    %9 = vector.load %arg3[%c1, %c0_8, %c0_9] : memref<2x8x256xf32, #tpu.memory_space<vmem>>, vector<1x8x256xf32>
    %10 = vector.shape_cast %9 : vector<1x8x256xf32> to vector<8x256xf32>
    %cst_10 = arith.constant dense<0.000000e+00> : vector<32x256xf32>
    %11 = tpu.matmul %0, %10, %cst_10 {dimension_numbers = #tpu.dot_dimension_numbers<[1], [0], [0], [1], [0, 0, 1, 1], [], []>} : vector<32x8xf32>, vector<8x256xf32>, vector<32x256xf32> -> vector<32x256xf32>
    %c1_11 = arith.constant 1 : index
    %c0_12 = arith.constant 0 : index
    %c0_13 = arith.constant 0 : index
    %12 = vector.load %arg4[%c1_11, %c0_12, %c0_13] : memref<2x32x256xf32, #tpu.memory_space<vmem>>, vector<1x32x256xf32>
    %13 = vector.shape_cast %12 : vector<1x32x256xf32> to vector<32x256xf32>
    %14 = vector.shape_cast %11 : vector<32x256xf32> to vector<1x32x256xf32>
    tpu.vector_store %arg4[%c1_11, %c0_12, %c0_13], %14 {strides = array<i32>} : memref<2x32x256xf32, #tpu.memory_space<vmem>>, vector<1x32x256xf32>,
    %cst_14 = arith.constant dense<0.000000e+00> : vector<32xf32>
    %15 = vector.multi_reduction <add>, %11, %cst_14 [1] : vector<32x256xf32> to vector<32xf32>
    %16 = vector.shape_cast %15 : vector<32xf32> to vector<32x1xf32>
    %17 = arith.addf %8, %16 : vector<32x1xf32>
    %cst_15 = arith.constant 0.001953125 : f32
    %18 = vector.broadcast %cst_15 : f32 to vector<32x1xf32>
    %19 = arith.mulf %17, %18 : vector<32x1xf32>
    %c0_16 = arith.constant 0 : index
    %c0_17 = arith.constant 0 : index
    %c0_18 = arith.constant 0 : index
    %20 = vector.load %arg4[%c0_16, %c0_17, %c0_18] : memref<2x32x256xf32, #tpu.memory_space<vmem>>, vector<1x32x256xf32>
    %21 = vector.shape_cast %20 : vector<1x32x256xf32> to vector<32x256xf32>
    %22 = vector.broadcast %19 : vector<32x1xf32> to vector<32x256xf32>
    %23 = arith.subf %21, %22 : vector<32x256xf32>
    %24 = arith.mulf %23, %23 : vector<32x256xf32>
    %cst_19 = arith.constant dense<0.000000e+00> : vector<32xf32>
    %25 = vector.multi_reduction <add>, %24, %cst_19 [1] : vector<32x256xf32> to vector<32xf32>
    %26 = vector.shape_cast %25 : vector<32xf32> to vector<32x1xf32>
    %c1_20 = arith.constant 1 : index
    %c0_21 = arith.constant 0 : index
    %c0_22 = arith.constant 0 : index
    %27 = vector.load %arg4[%c1_20, %c0_21, %c0_22] : memref<2x32x256xf32, #tpu.memory_space<vmem>>, vector<1x32x256xf32>
    %28 = vector.shape_cast %27 : vector<1x32x256xf32> to vector<32x256xf32>
    %29 = vector.broadcast %19 : vector<32x1xf32> to vector<32x256xf32>
    %30 = arith.subf %28, %29 : vector<32x256xf32>
    %31 = arith.mulf %30, %30 : vector<32x256xf32>
    %cst_23 = arith.constant dense<0.000000e+00> : vector<32xf32>
    %32 = vector.multi_reduction <add>, %31, %cst_23 [1] : vector<32x256xf32> to vector<32xf32>
    %33 = vector.shape_cast %32 : vector<32xf32> to vector<32x1xf32>
    %34 = arith.addf %26, %33 : vector<32x1xf32>
    %cst_24 = arith.constant 0.001953125 : f32
    %35 = vector.broadcast %cst_24 : f32 to vector<32x1xf32>
    %36 = arith.mulf %34, %35 : vector<32x1xf32>
    %cst_25 = arith.constant 9.99999974E-6 : f32
    %37 = vector.broadcast %cst_25 : f32 to vector<32x1xf32>
    %38 = arith.addf %36, %37 : vector<32x1xf32>
    %39 = math.rsqrt %38 : vector<32x1xf32>
    %c0_26 = arith.constant 0 : index
    %c0_27 = arith.constant 0 : index
    %40 = vector.load %arg1[%c0_26, %c0_27] : memref<32x1xf32, #tpu.memory_space<vmem>>, vector<32x1xf32>
    %41 = arith.mulf %40, %39 : vector<32x1xf32>
    %c0_28 = arith.constant 0 : index
    %c0_29 = arith.constant 0 : index
    %42 = vector.load %arg2[%c0_28, %c0_29] : memref<32x1xf32, #tpu.memory_space<vmem>>, vector<32x1xf32>
    %43 = arith.mulf %19, %41 : vector<32x1xf32>
    %44 = arith.subf %42, %43 : vector<32x1xf32>
    %c0_30 = arith.constant 0 : index
    %c0_31 = arith.constant 0 : index
    %c0_32 = arith.constant 0 : index
    %45 = vector.load %arg4[%c0_30, %c0_31, %c0_32] : memref<2x32x256xf32, #tpu.memory_space<vmem>>, vector<1x32x256xf32>
    %46 = vector.shape_cast %45 : vector<1x32x256xf32> to vector<32x256xf32>
    %47 = vector.broadcast %41 : vector<32x1xf32> to vector<32x256xf32>
    %48 = arith.mulf %46, %47 : vector<32x256xf32>
    %49 = vector.broadcast %44 : vector<32x1xf32> to vector<32x256xf32>
    %50 = arith.addf %48, %49 : vector<32x256xf32>
    %cst_33 = arith.constant 0.000000e+00 : f32
    %51 = vector.broadcast %cst_33 : f32 to vector<32x256xf32>
    %52 = arith.maximumf %50, %51 : vector<32x256xf32>
    %c0_34 = arith.constant 0 : index
    %c0_35 = arith.constant 0 : index
    %c0_36 = arith.constant 0 : index
    %53 = vector.load %arg4[%c0_34, %c0_35, %c0_36] : memref<2x32x256xf32, #tpu.memory_space<vmem>>, vector<1x32x256xf32>
    %54 = vector.shape_cast %53 : vector<1x32x256xf32> to vector<32x256xf32>
    %55 = vector.shape_cast %52 : vector<32x256xf32> to vector<1x32x256xf32>
    tpu.vector_store %arg4[%c0_34, %c0_35, %c0_36], %55 {strides = array<i32>} : memref<2x32x256xf32, #tpu.memory_space<vmem>>, vector<1x32x256xf32>,
    %c1_37 = arith.constant 1 : index
    %c0_38 = arith.constant 0 : index
    %c0_39 = arith.constant 0 : index
    %56 = vector.load %arg4[%c1_37, %c0_38, %c0_39] : memref<2x32x256xf32, #tpu.memory_space<vmem>>, vector<1x32x256xf32>
    %57 = vector.shape_cast %56 : vector<1x32x256xf32> to vector<32x256xf32>
    %58 = vector.broadcast %41 : vector<32x1xf32> to vector<32x256xf32>
    %59 = arith.mulf %57, %58 : vector<32x256xf32>
    %60 = vector.broadcast %44 : vector<32x1xf32> to vector<32x256xf32>
    %61 = arith.addf %59, %60 : vector<32x256xf32>
    %cst_40 = arith.constant 0.000000e+00 : f32
    %62 = vector.broadcast %cst_40 : f32 to vector<32x256xf32>
    %63 = arith.maximumf %61, %62 : vector<32x256xf32>
    %c1_41 = arith.constant 1 : index
    %c0_42 = arith.constant 0 : index
    %c0_43 = arith.constant 0 : index
    %64 = vector.load %arg4[%c1_41, %c0_42, %c0_43] : memref<2x32x256xf32, #tpu.memory_space<vmem>>, vector<1x32x256xf32>
    %65 = vector.shape_cast %64 : vector<1x32x256xf32> to vector<32x256xf32>
    %66 = vector.shape_cast %63 : vector<32x256xf32> to vector<1x32x256xf32>
    tpu.vector_store %arg4[%c1_41, %c0_42, %c0_43], %66 {strides = array<i32>} : memref<2x32x256xf32, #tpu.memory_space<vmem>>, vector<1x32x256xf32>,
    return
  }
}

</mosaic_0001>

<bundles_post_ra>
// kernel: tpu_custom_call.1
= control target key start
LH: loop header
LB: loop body
LE: loop exit
PB: predicated region body
PF: predicated region fallthrough
CT: control target
= control target key end

     0   :  { %vm24_vm0 = vcmask 64512   ;;  %v552_v5 = vmov 0.0   ;;  %s758_s0 = inlined_call_operand.vmem [shape: f32[32,8], index: 0, kind: input, shape index: {}]   ;;  %s759_s1 = inlined_call_operand.vmem [shape: f32[32,1], index: 1, kind: input, shape index: {}]   ;;  %s760_s2 = inlined_call_operand.vmem [shape: f32[32,1], index: 2, kind: input, shape index: {}]   ;;  %s761_s3 = inlined_call_operand.vmem [shape: f32[2,8,256], index: 3, kind: input, shape index: {}]   ;;  %s762_s4 = inlined_call_operand.hbm [shape: f32[2,32,256], index: 4, kind: output, shape index: {}]  }
   0x1   :  { %v23_v0 = vld [vmem:[%s761_s3 + $0x8] sm:$0xff]  ;;  %v508_v1 = vld [vmem:[%s761_s3 + $0x18] sm:$0xff]  ;;  %v22_v2 = vld [vmem:[%s761_s3] sm:$0xff]  ;;  %101 = vmatprep.mubr.f32.mxu0 %v552_v5 }
   0x2   :  { %37 = vmatprep.subr.mxu0 %v23_v0  ;;  %149 = vmatprep.subr.mxu1 %v508_v1  ;;  %v507_v3 = vld [vmem:[%s761_s3 + $0x10] sm:$0xff]  ;;  %v18_v4 = vld [vmem:[%s758_s0] sm:$0xff] }
   0x3   :  { %38 = vmatpush1.msra.mxu0 %v22_v2 }
   0x4   :  { %9 = vsyncpa [#allocation3], 0  ;;  %150 = vmatpush1.msra.mxu1 %v507_v3  ;;  %213 = vmatprep.mubr.f32.mxu1 %v552_v5  ;;  %v19_v6 = vld [vmem:[%s758_s0 + $0x8] sm:$0xff]  ;;  %v20_v7 = vld [vmem:[%s758_s0 + $0x10] sm:$0xff] }
   0x5   :  { %503 = vmatmul.mubr.msk.f32.vlgmr.msra.gmra.mrb[0].mxu0 %vm24_vm0, %v18_v4  ;;  %509 = vmatmul.mubr.msk.f32.vlgmr.msra.gmra.mrb[0].mxu1 %vm24_vm0, %v18_v4  ;;  %v21_v8 = vld [vmem:[%s758_s0 + $0x18] sm:$0xff] }
   0x6   :  { %107 = vmatprep.mubr.f32.mxu0 %v552_v5  ;;  %219 = vmatprep.mubr.f32.mxu1 %v552_v5 }
   0x9   :  { %504 = vmatmul.mubr.msk.f32.gmra.mrb[2].mxu0 %vm24_vm0, %v19_v6  ;;  %510 = vmatmul.mubr.msk.f32.gmra.mrb[2].mxu1 %vm24_vm0, %v19_v6 }
   0xa   :  { %113 = vmatprep.mubr.f32.mxu0 %v552_v5  ;;  %225 = vmatprep.mubr.f32.mxu1 %v552_v5 }
   0xd   :  { %505 = vmatmul.mubr.msk.f32.gmra.mrb[4].mxu0 %vm24_vm0, %v20_v7  ;;  %511 = vmatmul.mubr.msk.f32.gmra.mrb[4].mxu1 %vm24_vm0, %v20_v7 }
   0xe   :  { %119 = vmatprep.mubr.f32.mxu0 %v552_v5  ;;  %231 = vmatprep.mubr.f32.mxu1 %v552_v5 }
  0x11   :  { %506 = vmatmul.mubr.msk.f32.gmra.mrb[6].mxu0 %vm24_vm0, %v21_v8  ;;  %512 = vmatmul.mubr.msk.f32.gmra.mrb[6].mxu1 %vm24_vm0, %v21_v8 }
  0xd8   :  { %v614_v9 = vpop.f32.mrb[0].mxu0  ;;  %v616_v10 = vpop.f32.mrb[0].mxu1 }
  0xd9   :  { %v618_v11 = vpop.f32.mrb[1].mxu0  ;;  %v620_v12 = vpop.f32.mrb[1].mxu1 }
  0xda   :  { %v134_v13 = vadd.f32 %v618_v11, %v614_v9  ;;  %v247_v14 = vadd.f32 %v620_v12, %v616_v10 }
  0xdc   :  { %v626_v15 = vpop.f32.mrb[2].mxu1  ;;  %135 = vadd.xlane.f32.xlu0 %v134_v13  ;;  %v628_v16 = vpop.f32.mrb[2].mxu0 }
  0xdd   :  { %v630_v17 = vpop.f32.mrb[3].mxu1  ;;  %v632_v18 = vpop.f32.mrb[3].mxu0 }
  0xde   :  { %v250_v19 = vadd.f32 %v630_v17, %v626_v15  ;;  %v137_v20 = vadd.f32 %v632_v18, %v628_v16 }
  0xe0   :  { %251 = vadd.xlane.f32.xlu1 %v250_v19  ;;  %248 = vadd.xlane.f32.xlu0 %v247_v14  ;;  %v638_v21 = vpop.f32.mrb[4].mxu0  ;;  %v640_v22 = vpop.f32.mrb[4].mxu1 }
  0xe1   :  { %v642_v23 = vpop.f32.mrb[5].mxu0  ;;  %v644_v24 = vpop.f32.mrb[5].mxu1 }
  0xe2   :  { %v140_v25 = vadd.f32 %v642_v23, %v638_v21  ;;  %v253_v26 = vadd.f32 %v644_v24, %v640_v22 }
  0xe4   :  { %138 = vadd.xlane.f32.xlu0 %v137_v20  ;;  %141 = vadd.xlane.f32.xlu1 %v140_v25  ;;  %v650_v27 = vpop.f32.mrb[6].mxu0  ;;  %v652_v28 = vpop.f32.mrb[6].mxu1 }
  0xe5   :  { %v654_v29 = vpop.f32.mrb[7].mxu0  ;;  %v656_v30 = vpop.f32.mrb[7].mxu1 }
  0xe6   :  { %v143_v31 = vadd.f32 %v654_v29, %v650_v27  ;;  %v256_v32 = vadd.f32 %v656_v30, %v652_v28 }
  0xe8   :  { %254 = vadd.xlane.f32.xlu0 %v253_v26  ;;  %144 = vadd.xlane.f32.xlu1 %v143_v31 }
  0xec   :  { %257 = vadd.xlane.f32.xlu1 %v256_v32 }
 0x169   :  { %v136_v33 = vpop.xlane.xlu0 %135 }
 0x16d   :  { %v252_v34 = vpop.xlane.xlu1 %251  ;;  %v249_v35 = vpop.xlane.xlu0 %248 }
 0x16e   :  { %v259_v36 = vadd.f32 %v249_v35, %v136_v33 }
 0x170   :  { %v662_v37 = vmul.f32 0.001953125, %v259_v36 }
 0x171   :  { %v139_v38 = vpop.xlane.xlu0 %138  ;;  %v142_v39 = vpop.xlane.xlu1 %141 }
 0x172   :  { %v260_v40 = vadd.f32 %v252_v34, %v139_v38  ;;  %v275_v41 = vsub.f32 %v614_v9, %v662_v37  ;;  %v276_v42 = vsub.f32 %v618_v11, %v662_v37  ;;  %v311_v43 = vsub.f32 %v616_v10, %v662_v37 }
 0x173   :  { %v312_v44 = vsub.f32 %v620_v12, %v662_v37 }
 0x174   :  { %v672_v45 = vmul.f32 0.001953125, %v260_v40  ;;  %v283_v46 = vmul.f32 %v275_v41, %v275_v41  ;;  %v284_v47 = vmul.f32 %v276_v42, %v276_v42  ;;  %v319_v48 = vmul.f32 %v311_v43, %v311_v43 }
 0x175   :  { %v255_v49 = vpop.xlane.xlu0 %254  ;;  %v145_v50 = vpop.xlane.xlu1 %144  ;;  %v320_v51 = vmul.f32 %v312_v44, %v312_v44  ;;  %v553_v42 = vmov 0  }
 0x176   :  { %v261_v52 = vadd.f32 %v255_v49, %v142_v39  ;;  %v291_v53 = vadd.f32 %v284_v47, %v283_v46  ;;  %v277_v54 = vsub.f32 %v628_v16, %v672_v45  ;;  %v278_v55 = vsub.f32 %v632_v18, %v672_v45  ;;  %518 = vset.pattern.permute.xlu0 %v553_v42 }
 0x177   :  { %v327_v56 = vadd.f32 %v320_v51, %v319_v48  ;;  %v313_v57 = vsub.f32 %v626_v15, %v672_v45  ;;  %v314_v58 = vsub.f32 %v630_v17, %v672_v45  ;;  %519 = vset.pattern.permute.xlu1 %v553_v42 }
 0x178   :  { %v682_v59 = vmul.f32 0.001953125, %v261_v52  ;;  %292 = vadd.xlane.f32.xlu0 %v291_v53  ;;  %v285_v60 = vmul.f32 %v277_v54, %v277_v54  ;;  %v286_v61 = vmul.f32 %v278_v55, %v278_v55 }
 0x179   :  { %v258_v62 = vpop.xlane.xlu1 %257  ;;  %v321_v63 = vmul.f32 %v313_v57, %v313_v57  ;;  %v322_v0 = vmul.f32 %v314_v58, %v314_v58 }
 0x17a   :  { %v262_v1 = vadd.f32 %v258_v62, %v145_v50  ;;  %v294_v2 = vadd.f32 %v286_v61, %v285_v60  ;;  %v279_v3 = vsub.f32 %v638_v21, %v682_v59  ;;  %v280_v4 = vsub.f32 %v642_v23, %v682_v59 }
 0x17b   :  { %v330_v5 = vadd.f32 %v322_v0, %v321_v63  ;;  %v315_v6 = vsub.f32 %v640_v22, %v682_v59  ;;  %v316_v7 = vsub.f32 %v644_v24, %v682_v59  ;;  %v355_v63 = vld [vmem:[%s759_s1] sm:$0xff] }
 0x17c   :  { %v692_v8 = vmul.f32 0.001953125, %v262_v1  ;;  %328 = vadd.xlane.f32.xlu0 %v327_v56  ;;  %295 = vadd.xlane.f32.xlu1 %v294_v2  ;;  %v287_v13 = vmul.f32 %v279_v3, %v279_v3  ;;  %v288_v14 = vmul.f32 %v280_v4, %v280_v4  ;;  %v356_v3 = vld [vmem:[%s759_s1 + $0x8] sm:$0xff] }
 0x17d   :  { %v323_v19 = vmul.f32 %v315_v6, %v315_v6  ;;  %v324_v20 = vmul.f32 %v316_v7, %v316_v7 }
 0x17e   :  { %v297_v25 = vadd.f32 %v288_v14, %v287_v13  ;;  %v281_v26 = vsub.f32 %v650_v27, %v692_v8  ;;  %v282_v31 = vsub.f32 %v654_v29, %v692_v8  ;;  %v317_v32 = vsub.f32 %v652_v28, %v692_v8  ;;  %v363_v13 = vld [vmem:[%s760_s2] sm:$0xff] }
 0x17f   :  { %v333_v33 = vadd.f32 %v324_v20, %v323_v19  ;;  %v318_v34 = vsub.f32 %v656_v30, %v692_v8  ;;  %v357_v20 = vld [vmem:[%s759_s1 + $0x10] sm:$0xff] }
 0x180   :  { %298 = vadd.xlane.f32.xlu0 %v297_v25  ;;  %331 = vadd.xlane.f32.xlu1 %v330_v5  ;;  %v289_v35 = vmul.f32 %v281_v26, %v281_v26  ;;  %v290_v36 = vmul.f32 %v282_v31, %v282_v31  ;;  %v325_v38 = vmul.f32 %v317_v32, %v317_v32 }
 0x181   :  { %v326_v39 = vmul.f32 %v318_v34, %v318_v34 }
 0x182   :  { %v300_v40 = vadd.f32 %v290_v36, %v289_v35  ;;  %v365_v36 = vld [vmem:[%s760_s2 + $0x10] sm:$0xff] }
 0x183   :  { %v336_v41 = vadd.f32 %v326_v39, %v325_v38  ;;  %v366_v39 = vld [vmem:[%s760_s2 + $0x18] sm:$0xff] }
 0x184   :  { %334 = vadd.xlane.f32.xlu0 %v333_v33  ;;  %301 = vadd.xlane.f32.xlu1 %v300_v40  ;;  %v358_v33 = vld [vmem:[%s759_s1 + $0x18] sm:$0xff]  ;;  %s554_s1 = smov [#allocation2]  }
 0x188   :  { %337 = vadd.xlane.f32.xlu1 %v336_v41 }
 0x205   :  { %v293_v43 = vpop.xlane.xlu0 %292 }
 0x209   :  { %v329_v44 = vpop.xlane.xlu0 %328  ;;  %v296_v46 = vpop.xlane.xlu1 %295 }
 0x20a   :  { %v339_v47 = vadd.f32 %v329_v44, %v293_v43 }
 0x20c   :  { %v343_v48 = vmul.f32 0.001953125, %v339_v47 }
 0x20d   :  { %v299_v49 = vpop.xlane.xlu0 %298  ;;  %v332_v50 = vpop.xlane.xlu1 %331 }
 0x20e   :  { %v347_v51 = vadd.f32 1e-05, %v343_v48  ;;  %v340_v52 = vadd.f32 %v332_v50, %v296_v46 }
 0x210   :  { %520 = vrsqrt.f32 %v347_v51  ;;  %v344_v53 = vmul.f32 0.001953125, %v340_v52 }
 0x211   :  { %v335_v54 = vpop.xlane.xlu0 %334  ;;  %v302_v55 = vpop.xlane.xlu1 %301 }
 0x212   :  { %v348_v56 = vadd.f32 1e-05, %v344_v53  ;;  %v341_v57 = vadd.f32 %v335_v54, %v299_v49 }
 0x214   :  { %522 = vrsqrt.f32 %v348_v56  ;;  %v345_v58 = vmul.f32 0.001953125, %v341_v57 }
 0x215   :  { %v338_v60 = vpop.xlane.xlu1 %337 }
 0x216   :  { %v349_v61 = vadd.f32 1e-05, %v345_v58  ;;  %v342_v62 = vadd.f32 %v338_v60, %v302_v55 }
 0x218   :  { %524 = vrsqrt.f32 %v349_v61  ;;  %v346_v1 = vmul.f32 0.001953125, %v342_v62 }
 0x21a   :  { %v521_v0 = vpop.eup %520  ;;  %v350_v5 = vadd.f32 1e-05, %v346_v1 }
 0x21b   :  { %v359_v2 = vmul.f32 %v521_v0, %v355_v63 }
 0x21c   :  { %526 = vrsqrt.f32 %v350_v5 }
 0x21d   :  { %377 = vperm.xlu0 %518, %v359_v2   ;;  %v367_v7 = vmul.f32 %v359_v2, %v662_v37  ;;  %v364_v37 = vld [vmem:[%s760_s2 + $0x8] sm:$0xff]  ;;  %s492_s2 = sshll.u32 %s554_s1, 4  ;;  %s493_s2 = int_to_ptr.vmem [resolvable:$true] %s492_s2 }
 0x21e   :  { %v523_v4 = vpop.eup %522  ;;  %s528_s19 = scalar_lea.vmem %s493_s2, 2048  ;;  %p533_p1 = scmp.lt.s32.totalorder %s493_s2, %s493_s2 }
 0x21f   :  { %v360_v6 = vmul.f32 %v523_v4, %v356_v3  ;;  %v371_v14 = vsub.f32 %v363_v13, %v367_v7  ;;  %p529_p0 = scmp.ne.s32.totalorder %s493_s2, %s528_s19  ;;  %p534_p2 = scmp.lt.s32.totalorder %s528_s19, %s528_s19 }
 0x221   :  { %382 = vperm.xlu1 %519, %v360_v6   ;;  %v368_v26 = vmul.f32 %v360_v6, %v672_v45  ;;  %p535_p3 = por %p534_p2, %p533_p1 }
 0x222   :  { %v525_v19 = vpop.eup %524 }
 0x223   :  { %v361_v25 = vmul.f32 %v525_v19, %v357_v20  ;;  %v372_v31 = vsub.f32 %v364_v37, %v368_v26  ;;  %p536_p4 = pnand %p535_p3, %p529_p0 }
 0x225   :  { %405 = vperm.xlu1 %519, %v371_v14   ;;  %v369_v35 = vmul.f32 %v361_v25, %v682_v59 }
 0x226   :  { %v527_v32 = vpop.eup %526 }
 0x227   :  { %v362_v34 = vmul.f32 %v527_v32, %v358_v33  ;;  %v373_v45 = vsub.f32 %v365_v36, %v369_v35 }
 0x229   :  { %387 = vperm.xlu1 %519, %v361_v25   ;;  %v370_v38 = vmul.f32 %v362_v34, %v692_v8 }
 0x22b   :  { %v374_v40 = vsub.f32 %v366_v39, %v370_v38 }
 0x22d   :  { %410 = vperm.xlu1 %519, %v372_v31  }
 0x231   :  { %392 = vperm.xlu1 %519, %v362_v34  }
 0x235   :  { %415 = vperm.xlu1 %519, %v373_v45  }
 0x239   :  { %420 = vperm.xlu1 %519, %v374_v40  }
 0x29c   :  { %v378_v41 = vpop.permute.xlu0 %377 }
 0x29d   :  { %v395_v43 = vmul.f32 %v378_v41, %v614_v9  ;;  %v396_v59 = vmul.f32 %v378_v41, %v618_v11  ;;  %v455_v44 = vmul.f32 %v378_v41, %v616_v10  ;;  %v456_v46 = vmul.f32 %v378_v41, %v620_v12 }
 0x2a0   :  { %v383_v42 = vpop.permute.xlu1 %382 }
 0x2a1   :  { %v397_v9 = vmul.f32 %v383_v42, %v628_v16  ;;  %v398_v10 = vmul.f32 %v383_v42, %v632_v18  ;;  %v457_v11 = vmul.f32 %v383_v42, %v626_v15  ;;  %v458_v12 = vmul.f32 %v383_v42, %v630_v17 }
 0x2a4   :  { %v406_v47 = vpop.permute.xlu1 %405 }
 0x2a5   :  { %v423_v48 = vadd.f32 %v406_v47, %v395_v43  ;;  %v424_v8 = vadd.f32 %v406_v47, %v396_v59  ;;  %v463_v49 = vadd.f32 %v455_v44, %v406_v47  ;;  %v464_v50 = vadd.f32 %v456_v46, %v406_v47 }
 0x2a7   :  { %v431_v51 = vmax.f32 %v423_v48, 0.0  ;;  %v432_v52 = vmax.f32 %v424_v8, 0.0  ;;  %v471_v53 = vmax.f32 %v463_v49, 0.0  ;;  %v472_v54 = vmax.f32 %v464_v50, 0.0 }
 0x2a8   :  { %v388_v55 = vpop.permute.xlu1 %387 }
 0x2a9   :  { %439 = vst [vmem:[#allocation2] sm:$0xff] %v431_v51  ;;  %440 = vst [vmem:[#allocation2 + $0x8] sm:$0xff] %v432_v52  ;;  %v399_v16 = vmul.f32 %v388_v55, %v638_v21  ;;  %v400_v15 = vmul.f32 %v388_v55, %v642_v23  ;;  %v459_v17 = vmul.f32 %v388_v55, %v640_v22 }
 0x2aa   :  { %479 = vst [vmem:[#allocation2 + $0x40] sm:$0xff] %v471_v53  ;;  %480 = vst [vmem:[#allocation2 + $0x48] sm:$0xff] %v472_v54  ;;  %v460_v18 = vmul.f32 %v388_v55, %v644_v24 }
 0x2ac   :  { %v411_v56 = vpop.permute.xlu1 %410 }
 0x2ad   :  { %v425_v57 = vadd.f32 %v411_v56, %v397_v9  ;;  %v426_v58 = vadd.f32 %v411_v56, %v398_v10  ;;  %v465_v60 = vadd.f32 %v457_v11, %v411_v56  ;;  %v466_v61 = vadd.f32 %v458_v12, %v411_v56 }
 0x2af   :  { %v433_v62 = vmax.f32 %v425_v57, 0.0  ;;  %v434_v63 = vmax.f32 %v426_v58, 0.0  ;;  %v473_v0 = vmax.f32 %v465_v60, 0.0  ;;  %v474_v1 = vmax.f32 %v466_v61, 0.0 }
 0x2b0   :  { %v393_v2 = vpop.permute.xlu1 %392 }
 0x2b1   :  { %441 = vst [vmem:[#allocation2 + $0x10] sm:$0xff] %v433_v62  ;;  %442 = vst [vmem:[#allocation2 + $0x18] sm:$0xff] %v434_v63  ;;  %v401_v13 = vmul.f32 %v393_v2, %v650_v27  ;;  %v402_v14 = vmul.f32 %v393_v2, %v654_v29  ;;  %v461_v19 = vmul.f32 %v393_v2, %v652_v28 }
 0x2b2   :  { %481 = vst [vmem:[#allocation2 + $0x50] sm:$0xff] %v473_v0  ;;  %482 = vst [vmem:[#allocation2 + $0x58] sm:$0xff] %v474_v1  ;;  %v462_v20 = vmul.f32 %v393_v2, %v656_v30 }
 0x2b4   :  { %v416_v3 = vpop.permute.xlu1 %415 }
 0x2b5   :  { %v427_v4 = vadd.f32 %v416_v3, %v399_v16  ;;  %v428_v5 = vadd.f32 %v416_v3, %v400_v15  ;;  %v467_v6 = vadd.f32 %v459_v17, %v416_v3  ;;  %v468_v7 = vadd.f32 %v460_v18, %v416_v3 }
 0x2b7   :  { %v435_v21 = vmax.f32 %v427_v4, 0.0  ;;  %v436_v25 = vmax.f32 %v428_v5, 0.0  ;;  %v475_v23 = vmax.f32 %v467_v6, 0.0  ;;  %v476_v26 = vmax.f32 %v468_v7, 0.0 }
 0x2b8   :  { %v421_v22 = vpop.permute.xlu1 %420 }
 0x2b9   :  { %443 = vst [vmem:[#allocation2 + $0x20] sm:$0xff] %v435_v21  ;;  %444 = vst [vmem:[#allocation2 + $0x28] sm:$0xff] %v436_v25  ;;  %v429_v24 = vadd.f32 %v421_v22, %v401_v13  ;;  %v430_v37 = vadd.f32 %v421_v22, %v402_v14  ;;  %v469_v27 = vadd.f32 %v461_v19, %v421_v22 }
 0x2ba   :  { %483 = vst [vmem:[#allocation2 + $0x60] sm:$0xff] %v475_v23  ;;  %484 = vst [vmem:[#allocation2 + $0x68] sm:$0xff] %v476_v26  ;;  %v470_v31 = vadd.f32 %v462_v20, %v421_v22 }
 0x2bb   :  { %v437_v29 = vmax.f32 %v429_v24, 0.0  ;;  %v438_v32 = vmax.f32 %v430_v37, 0.0  ;;  %v477_v28 = vmax.f32 %v469_v27, 0.0 }
 0x2bc   :  { %v478_v33 = vmax.f32 %v470_v31, 0.0 }
 0x2bd   :  { %445 = vst [vmem:[#allocation2 + $0x30] sm:$0xff] %v437_v29  ;;  %446 = vst [vmem:[#allocation2 + $0x38] sm:$0xff] %v438_v32 }
 0x2be   :  { %485 = vst [vmem:[#allocation2 + $0x70] sm:$0xff] %v477_v28  ;;  %486 = vst [vmem:[#allocation2 + $0x78] sm:$0xff] %v478_v33 }
 0x2bf   :  { %539 = shalt.err (!%p536_p4)
}
 0x2c0   :  { %s540_s22 = scalar_lea.hbm %s762_s4, 2048 }
 0x2c1   :  { %p541_p5 = scmp.ne.s32.totalorder %s762_s4, %s540_s22  ;;  %p544_p6 = scmp.lt.u32.totalorder %s540_s22, %s762_s4 }
 0x2c3   :  { %p546_p7 = pnand %p544_p6, %p541_p5 }
 0x2c5   :  { %549 = shalt.err (!%p546_p7)
}
 0x2c6   :  { %s555_s3 = smov 256   ;;  %s556_s27 = smov 16  }
 0x2c7   :  { %498 = dma.vmem_to_hbm [thread:$0]  %s493_s2, 2048, %s762_s4, [#allocation3], %s555_s3, %s555_s3, %s556_s27  }
 0x2c8   :  { %550 = dma.done.wait [#allocation3], 2048  }
 0x2c9   :  { %551 = vsyncadd [#allocation3], 4294965248 }
 0x2ca   :  { %502 = vsyncpa [#allocation3], 1 }

</bundles_post_ra>
